<compile_context>
chip_gen: v7x
topology: tpu7x:2x2x1
jax: 0.10.0
libtpu: 0.0.40
codegen_flags: <defaults>
</compile_context>

<pallas_src>
import functools

import jax
import jax.numpy as jnp
from jax.experimental import pallas as pl
from jax.experimental.pallas import tpu as pltpu


def _round_up(x, m):
    return (x + m - 1) // m * m


def _vmem_capacity_bytes():
    try:
        info = pltpu.get_tpu_info()
        cap = getattr(info, "vmem_capacity_bytes", None)
        if cap:
            return int(cap)
    except Exception:
        pass
    return 64 * 1024 * 1024


def _vmem_limit_bytes():
    cap = _vmem_capacity_bytes()
    if cap >= 128 * 1024 * 1024:                      # v5e / v6e class parts
        return 96 * 1024 * 1024
    return min(48 * 1024 * 1024, (cap * 3) // 4)      # v7x class (64 MiB VMEM)


def _max_edge_tile():
    return 1024 if _vmem_capacity_bytes() >= 128 * 1024 * 1024 else 512


def _edge_tiling(num_edges):
    """(padded edge count, edge tile) satisfying TPU (8,128) block rules."""
    max_tile = _max_edge_tile()
    if num_edges <= max_tile:
        e_pad = _round_up(max(num_edges, 8), 8)
        return e_pad, e_pad                           # single tile == full dim
    e_pad = _round_up(num_edges, max_tile)
    return e_pad, max_tile                            # tile is a multiple of 128


def _layer_norm(x, g, b, eps=1e-5):
    mu = jnp.mean(x, axis=-1, keepdims=True)
    var = jnp.mean((x - mu) ** 2, axis=-1, keepdims=True)
    return (x - mu) * jax.lax.rsqrt(var + eps) * g + b


# ----------------------------- Pallas kernels ------------------------------ #

def embedding_proj_kernel(feat_ref, dstr_ref, w1_ref, b1_ref, wa_ref, ba_ref,
                          wb_ref, bb_ref, lng_ref, lnb_ref, wall_ref, ball_ref,
                          out_ref, acc_ref):
    """Per-edge MLP message (Linear/ReLU/LN x3) + scatter-add over destination
    nodes (resident f32 accumulator, edge axis gridded) + fused GAT1
    [Wq|Wk|Wv|Wskip] projection epilogue (128-lane store)."""
    e = pl.program_id(0)

    @pl.when(e == 0)
    def _init():
        acc_ref[...] = jnp.zeros_like(acc_ref)

    g = lng_ref[...]
    be = lnb_ref[...]
    h = jnp.dot(feat_ref[...].astype(jnp.bfloat16), w1_ref[...],
                preferred_element_type=jnp.float32) + b1_ref[...]
    h = _layer_norm(jnp.maximum(h, 0.0), g, be)
    h = jnp.dot(h.astype(jnp.bfloat16), wa_ref[...],
                preferred_element_type=jnp.float32) + ba_ref[...]
    h = _layer_norm(jnp.maximum(h, 0.0), g, be)
    h = jnp.dot(h.astype(jnp.bfloat16), wb_ref[...],
                preferred_element_type=jnp.float32) + bb_ref[...]
    h = _layer_norm(jnp.maximum(h, 0.0), g, be)

    dst = dstr_ref[...]                                               # (1, TE); -1 = pad
    node_ids = jax.lax.broadcasted_iota(
        jnp.int32, (acc_ref.shape[0], dst.shape[1]), 0)
    onehot = (node_ids == dst).astype(jnp.float32)                    # (Nn, TE)
    acc_ref[...] += jnp.dot(onehot, h, preferred_element_type=jnp.float32)

    @pl.when(e == pl.num_programs(0) - 1)
    def _finalize():
        # TODO(synk): transposed (node-on-lanes) aggregation would also make the
        #             scatter matmul's N dim lane-dense; epilogue fusion already
        #             gives the 128-lane store.
        out_ref[...] = jnp.dot(acc_ref[...].astype(jnp.bfloat16), wall_ref[...],
                               preferred_element_type=jnp.float32) + ball_ref[...]


def transformer_conv_kernel(*refs, heads, out_ch, apply_relu, fuse_next):
    """PyG TransformerConv (concat=False, beta=False, root_weight=True).

    Node projections [q|k|v|skip] stay resident; per-tile edge gathers and the
    destination scatter are one-hot matmuls.  Segment softmax divides AFTER
    aggregation; the shift is the per-tile score max, accumulated per node with
    flash-style rescaling (f32 end-to-end, exact reciprocal)."""
    if fuse_next:
        (proj_ref, ea_ref, srcc_ref, dstc_ref, dstr_ref, we_ref,
         bsum_ref, bexp_ref, bmean_ref, wnext_ref, bnext_ref,
         out_ref, num_sc, den_sc, shift_sc) = refs
    else:
        (proj_ref, ea_ref, srcc_ref, dstc_ref, dstr_ref, we_ref,
         bsum_ref, bexp_ref, bmean_ref,
         out_ref, num_sc, den_sc, shift_sc) = refs
        wnext_ref = bnext_ref = None

    e = pl.program_id(0)
    hc = heads * out_ch

    @pl.when(e == 0)
    def _init():
        num_sc[...] = jnp.zeros_like(num_sc)
        den_sc[...] = jnp.zeros_like(den_sc)
        shift_sc[...] = jnp.full_like(shift_sc, -1e30)

    proj = proj_ref[...]                                              # (Nn, Pin) f32
    n_pad = proj.shape[0]
    src_c = srcc_ref[...]                                             # (TE, 1)
    dst_c = dstc_ref[...]                                             # (TE, 1); -1 = pad
    dst_r = dstr_ref[...]                                             # (1, TE)
    te = src_c.shape[0]

    lane_nodes = jax.lax.broadcasted_iota(jnp.int32, (te, n_pad), 1)
    oh_src = (lane_nodes == src_c).astype(jnp.float32)                # gather x_j
    oh_dst = (lane_nodes == dst_c).astype(jnp.float32)                # gather x_i
    sub_nodes = jax.lax.broadcasted_iota(jnp.int32, (n_pad, te), 0)
    oh_agg = (sub_nodes == dst_r).astype(jnp.float32)                 # scatter by dst

    # Lane-dense whole-row gathers of the fused projections (f32, exact pick).
    g_dst = jnp.dot(oh_dst, proj, preferred_element_type=jnp.float32)  # (TE, Pin)
    g_src = jnp.dot(oh_src, proj, preferred_element_type=jnp.float32)

    ep = jnp.dot(ea_ref[...].astype(jnp.bfloat16), we_ref[...],
                 preferred_element_type=jnp.float32)                  # (TE, H*C)
    q = g_dst[:, :hc]
    k = g_src[:, hc:2 * hc] + ep
    v = g_src[:, 2 * hc:3 * hc] + ep

    # Per-head scores via block-indicator matmul (no per-head lane slicing).
    scale = 1.0 / (out_ch ** 0.5)
    score = jnp.dot(q * k, bsum_ref[...],
                    preferred_element_type=jnp.float32) * scale       # (TE, heads)
    score = jnp.where(dst_c >= 0, score, -1e30)                       # kill padded edges

    # Streaming segment softmax: per-tile shift, per-node rescaled accumulation.
    g_t = jnp.max(score, keepdims=True)                               # (1, 1)
    p = jnp.exp(score - g_t)                                          # (TE, heads) f32
    pv = jnp.dot(p, bexp_ref[...], preferred_element_type=jnp.float32) * v   # (TE, H*C)

    shift_old = shift_sc[...]                                         # (Nn, 1)
    shift_new = jnp.maximum(shift_old, g_t)
    a_old = jnp.exp(shift_old - shift_new)
    a_new = jnp.exp(g_t - shift_new)
    num_sc[...] = num_sc[...] * a_old + a_new * jnp.dot(
        oh_agg, pv, preferred_element_type=jnp.float32)
    den_sc[...] = den_sc[...] * a_old + a_new * jnp.dot(
        oh_agg, p, preferred_element_type=jnp.float32)
    shift_sc[...] = shift_new

    @pl.when(e == pl.num_programs(0) - 1)
    def _finalize():
        inv_den = pl.reciprocal(jnp.maximum(den_sc[...], 1e-30), approx=False)
        inv_full = jnp.dot(inv_den, bexp_ref[...],
                           preferred_element_type=jnp.float32)        # (Nn, H*C)
        mixed = jnp.dot(num_sc[...] * inv_full, bmean_ref[...],
                        preferred_element_type=jnp.float32)           # head mean (Nn, C)
        out = mixed + proj[:, 3 * hc:3 * hc + out_ch]                 # + root skip
        if apply_relu:
            out = jnp.maximum(out, 0.0)
        if fuse_next:                                                 # fused next-layer proj
            out = jnp.dot(out.astype(jnp.bfloat16), wnext_ref[...],
                          preferred_element_type=jnp.float32) + bnext_ref[...]
        out_ref[...] = out


# ------------------------------ kernel wrappers ----------------------------- #

def _call_embedding_proj(feat, dst_row, pk, n_pad, edge_tile):
    e_pad, fdim = feat.shape
    hidden = pk['emb_w1'].shape[1]
    p1 = pk['wall1'].shape[1]
    full = lambda e: (0, 0)
    return pl.pallas_call(
        embedding_proj_kernel,
        out_shape=jax.ShapeDtypeStruct((n_pad, p1), jnp.float32),
        grid=(e_pad // edge_tile,),
        in_specs=[
            pl.BlockSpec((edge_tile, fdim), lambda e: (e, 0)),
            pl.BlockSpec((1, edge_tile), lambda e: (0, e)),
            pl.BlockSpec(pk['emb_w1'].shape, full),
            pl.BlockSpec(pk['emb_b1'].shape, full),
            pl.BlockSpec(pk['emb_wa'].shape, full),
            pl.BlockSpec(pk['emb_ba'].shape, full),
            pl.BlockSpec(pk['emb_wb'].shape, full),
            pl.BlockSpec(pk['emb_bb'].shape, full),
            pl.BlockSpec(pk['emb_ln_g'].shape, full),
            pl.BlockSpec(pk['emb_ln_b'].shape, full),
            pl.BlockSpec(pk['wall1'].shape, full),
            pl.BlockSpec(pk['ball1'].shape, full),
        ],
        out_specs=pl.BlockSpec((n_pad, p1), full),
        scratch_shapes=[pltpu.VMEM((n_pad, hidden), jnp.float32)],
        compiler_params=pltpu.CompilerParams(
            dimension_semantics=("arbitrary",),
            vmem_limit_bytes=_vmem_limit_bytes()),
    )(feat, dst_row, pk['emb_w1'], pk['emb_b1'], pk['emb_wa'], pk['emb_ba'],
      pk['emb_wb'], pk['emb_bb'], pk['emb_ln_g'], pk['emb_ln_b'],
      pk['wall1'], pk['ball1'])


def _call_transformer_conv(proj, ea, src_col, dst_col, dst_row, we, bsum, bexp,
                           bmean, edge_tile, *, heads, out_ch, apply_relu,
                           wnext=None, bnext=None):
    n_pad, pin = proj.shape
    e_pad = ea.shape[0]
    hc = heads * out_ch
    fuse_next = wnext is not None
    out_w = wnext.shape[1] if fuse_next else out_ch
    full = lambda e: (0, 0)

    in_specs = [
        pl.BlockSpec((n_pad, pin), full),
        pl.BlockSpec((edge_tile, ea.shape[1]), lambda e: (e, 0)),
        pl.BlockSpec((edge_tile, 1), lambda e: (e, 0)),
        pl.BlockSpec((edge_tile, 1), lambda e: (e, 0)),
        pl.BlockSpec((1, edge_tile), lambda e: (0, e)),
        pl.BlockSpec(we.shape, full),
        pl.BlockSpec(bsum.shape, full),
        pl.BlockSpec(bexp.shape, full),
        pl.BlockSpec(bmean.shape, full),
    ]
    args = [proj, ea, src_col, dst_col, dst_row, we, bsum, bexp, bmean]
    if fuse_next:
        in_specs += [pl.BlockSpec(wnext.shape, full), pl.BlockSpec(bnext.shape, full)]
        args += [wnext, bnext]

    kern = functools.partial(transformer_conv_kernel, heads=heads, out_ch=out_ch,
                             apply_relu=apply_relu, fuse_next=fuse_next)
    # TODO(synk): on v7x, add a leading 'parallel' per-graph grid axis (scalar-
    #             prefetched per-graph edge offsets) so both TensorCores are used.
    return pl.pallas_call(
        kern,
        out_shape=jax.ShapeDtypeStruct((n_pad, out_w), jnp.float32),
        grid=(e_pad // edge_tile,),
        in_specs=in_specs,
        out_specs=pl.BlockSpec((n_pad, out_w), full),
        scratch_shapes=[pltpu.VMEM((n_pad, hc), jnp.float32),
                        pltpu.VMEM((n_pad, heads), jnp.float32),
                        pltpu.VMEM((n_pad, 1), jnp.float32)],
        compiler_params=pltpu.CompilerParams(
            dimension_semantics=("arbitrary",),
            vmem_limit_bytes=_vmem_limit_bytes()),
    )(*args)


# ------------------------------ parameters --------------------------------- #

def _orthogonal(key, rows, cols, gain=1.0):
    n = max(rows, cols)
    a = jax.random.normal(key, (n, n), dtype=jnp.float32)
    q, _ = jnp.linalg.qr(a)
    return (gain * q[:rows, :cols]).astype(jnp.float32)


def init_params(key, edge_dim, num_heads, out_channels, hidden=16):
    ks = jax.random.split(key, 6)
    p = {}
    p['entity_embed'] = jax.random.normal(ks[0], (5, 4), dtype=jnp.float32)
    p['emb_w1'] = _orthogonal(ks[1], 4 + edge_dim, hidden)
    p['emb_b1'] = jnp.zeros((1, hidden), jnp.float32)
    p['emb_wa'] = _orthogonal(ks[2], hidden, hidden)
    p['emb_ba'] = jnp.zeros((1, hidden), jnp.float32)
    p['emb_wb'] = _orthogonal(ks[3], hidden, hidden)
    p['emb_bb'] = jnp.zeros((1, hidden), jnp.float32)
    p['emb_ln_g'] = jnp.ones((1, hidden), jnp.float32)
    p['emb_ln_b'] = jnp.zeros((1, hidden), jnp.float32)

    def gat_params(kk, in_c, c, heads):
        kk = jax.random.split(kk, 5)
        return {
            'wq': _orthogonal(kk[0], in_c, heads * c),
            'bq': jnp.zeros((1, heads * c), jnp.float32),
            'wk': _orthogonal(kk[1], in_c, heads * c),
            'bk': jnp.zeros((1, heads * c), jnp.float32),
            'wv': _orthogonal(kk[2], in_c, heads * c),
            'bv': jnp.zeros((1, heads * c), jnp.float32),
            'we': _orthogonal(kk[3], edge_dim, heads * c),            # lin_edge: no bias
            'wskip': _orthogonal(kk[4], in_c, c),
            'bskip': jnp.zeros((1, c), jnp.float32),
        }

    p['gat1'] = gat_params(ks[4], hidden, hidden, num_heads)
    p['gat2'] = gat_params(ks[5], hidden, out_channels, num_heads)
    return p


def _head_indicators(heads, c):
    hc = heads * c
    row_head = jnp.arange(hc, dtype=jnp.int32) // c
    bsum = (row_head[:, None] == jnp.arange(heads, dtype=jnp.int32)[None, :]
            ).astype(jnp.float32)                                     # (H*C, H)
    bexp = jnp.asarray(bsum.T)                                        # (H, H*C)
    row_ch = jnp.arange(hc, dtype=jnp.int32) % c
    bmean = (row_ch[:, None] == jnp.arange(c, dtype=jnp.int32)[None, :]
             ).astype(jnp.float32) / heads                            # (H*C, C)
    return bsum, bexp, bmean


def pack_params(params, edge_dim, num_heads, out_channels, hidden=16):
    """Hoist all weight concats / zero-pads / bf16 casts out of the forward."""
    ea_w = _round_up(max(edge_dim, 1), 8)
    feat_w = 4 + edge_dim
    feat_pad = _round_up(feat_w, 8)

    pk = {'entity_embed': params['entity_embed'],
          'edge_dim': edge_dim, 'ea_w': ea_w, 'feat_pad': feat_pad,
          'hidden': hidden, 'heads': num_heads, 'out_channels': out_channels}

    w1 = jnp.zeros((feat_pad, hidden), jnp.float32).at[:feat_w].set(params['emb_w1'])
    pk['emb_w1'] = w1.astype(jnp.bfloat16)
    pk['emb_b1'] = params['emb_b1']
    pk['emb_wa'] = params['emb_wa'].astype(jnp.bfloat16)
    pk['emb_ba'] = params['emb_ba']
    pk['emb_wb'] = params['emb_wb'].astype(jnp.bfloat16)
    pk['emb_bb'] = params['emb_bb']
    pk['emb_ln_g'] = params['emb_ln_g']
    pk['emb_ln_b'] = params['emb_ln_b']

    def fused_proj(g, c):
        w = jnp.concatenate([g['wq'], g['wk'], g['wv'], g['wskip']], axis=1)
        b = jnp.concatenate([g['bq'], g['bk'], g['bv'], g['bskip']], axis=1)
        wpad = _round_up(w.shape[1], 128)
        w_full = jnp.zeros((w.shape[0], wpad), jnp.float32).at[:, :w.shape[1]].set(w)
        b_full = jnp.zeros((1, wpad), jnp.float32).at[:, :b.shape[1]].set(b)
        we = jnp.zeros((ea_w, num_heads * c), jnp.float32).at[:edge_dim].set(g['we'])
        return w_full.astype(jnp.bfloat16), b_full, we.astype(jnp.bfloat16)

    pk['wall1'], pk['ball1'], pk['we1'] = fused_proj(params['gat1'], hidden)
    pk['wall2'], pk['ball2'], pk['we2'] = fused_proj(params['gat2'], out_channels)
    pk['bsum1'], pk['bexp1'], pk['bmean1'] = _head_indicators(num_heads, hidden)
    pk['bsum2'], pk['bexp2'], pk['bmean2'] = _head_indicators(num_heads, out_channels)
    return pk


# ------------------------------ forward pass -------------------------------- #

def gnnbase_forward(pk, nodes_feats, edge_index, edge_attr, agent_id,
                    *, graph_aggr='agent'):
    B, N, _ = nodes_feats.shape
    edge_dim = pk['edge_dim']
    heads = pk['heads']
    hidden = pk['hidden']
    out_channels = pk['out_channels']
    n_tot = B * N
    n_pad = _round_up(max(n_tot, 8), 8)

    # batch -> flat-graph edge index remap (edge_index_adder), in int32.
    ei = edge_index.astype(jnp.int32)
    offsets = (N * jnp.arange(B, dtype=jnp.int32))[:, None, None]
    new_ei = jnp.transpose(ei + offsets, (1, 0, 2)).reshape(2, -1)    # (2, E)
    src, dst = new_ei[0], new_ei[1]
    E = src.shape[0]
    # TODO(synk): torch's NaN-mask filtering yields data-dependent shapes; inputs assumed NaN-free.

    x = nodes_feats.reshape(-1, nodes_feats.shape[-1]).astype(jnp.float32)
    ea = edge_attr.reshape(-1, edge_dim).astype(jnp.float32)

    e_pad, edge_tile = _edge_tiling(E)
    pad_e = e_pad - E
    src_p = jnp.pad(src, (0, pad_e))                                  # pad with 0 (never scattered)
    dst_p = jnp.pad(dst, (0, pad_e), constant_values=-1)              # -1 marks padded edges
    dst_row = dst_p.reshape(1, e_pad)
    dst_col = dst_p.reshape(e_pad, 1)
    src_col = src_p.reshape(e_pad, 1)

    ea_rows = jnp.pad(ea, ((0, pad_e), (0, pk['ea_w'] - edge_dim)))   # (e_pad, 8)

    # Embedding.message inputs: entity-type lookup of x_j + edge_attr, width padded to 8.
    etype = jnp.clip(x[src_p, -1].astype(jnp.int32), 0, 4)
    emb = jnp.take(pk['entity_embed'], etype, axis=0)                 # (e_pad, 4)
    feat = jnp.concatenate([emb, ea_rows[:, :edge_dim]], axis=1)
    feat = jnp.pad(feat, ((0, 0), (0, pk['feat_pad'] - feat.shape[1])))

    # Kernel 1: edge MLP + scatter-add + fused GAT1 projection  -> (n_pad, 128)
    proj1 = _call_embedding_proj(feat, dst_row, pk, n_pad, edge_tile)

    # Kernel 2: GAT1 conv (in-kernel gather) + fused GAT2 projection -> (n_pad, 128)
    proj2 = _call_transformer_conv(
        proj1, ea_rows, src_col, dst_col, dst_row, pk['we1'],
        pk['bsum1'], pk['bexp1'], pk['bmean1'], edge_tile,
        heads=heads, out_ch=hidden, apply_relu=False,
        wnext=pk['wall2'], bnext=pk['ball2'])

    # Kernel 3: GAT2 conv + final ReLU -> (n_pad, out_channels)
    A = _call_transformer_conv(
        proj2, ea_rows, src_col, dst_col, dst_row, pk['we2'],
        pk['bsum2'], pk['bexp2'], pk['bmean2'], edge_tile,
        heads=heads, out_ch=out_channels, apply_relu=True)

    A = A[:n_tot].reshape(B, N, -1)
    if graph_aggr == 'agent':
        idx = agent_id.astype(jnp.int32).reshape(B)
        return A[jnp.arange(B), idx]                                  # (B, out_channels)
    # TODO(synk): 'graph' aggregation averages over a data-dependent number of agent
    #             nodes (torch.sum(nodes_feats == 0)/B); not expressible with static shapes.
    return A


# ---------------------------------- main ------------------------------------ #

if __name__ == "__main__":
    key = jax.random.PRNGKey(0)
    B, N, Eg = 2, 5, 8
    edge_dim, num_heads, out_channels = 2, 2, 8

    kp, kn, ke, ka = jax.random.split(key, 4)
    params = init_params(kp, edge_dim, num_heads, out_channels)
    packed = pack_params(params, edge_dim, num_heads, out_channels)

    # node feature = entity type id in [0, 5) stored as float (only column)
    nodes_feats = jax.random.randint(kn, (B, N, 1), 0, 5).astype(jnp.float32)
    nodes_feats = nodes_feats.at[:, 0, 0].set(0.0)                    # node 0 is the agent
    edge_index = jax.random.randint(ke, (B, 2, Eg), 0, N).astype(jnp.float32)
    edge_attr = jax.random.normal(ka, (B, Eg, edge_dim), dtype=jnp.float32)
    agent_id = jnp.zeros((B, 1), dtype=jnp.int32)

    out = gnnbase_forward(packed, nodes_feats, edge_index, edge_attr, agent_id,
                          graph_aggr='agent')
    out = jax.block_until_ready(out)
    assert out.shape == (B, out_channels), out.shape
    assert bool(jnp.all(jnp.isfinite(out)))
    print("KERNEL_OK")
</pallas_src>

<mosaic_0001>
module attributes {stable_mosaic.version = 11 : i64} {
  func.func @embedding_proj_kernel(%arg0: i32, %arg1: memref<16x8xf32, #tpu.memory_space<vmem>>, %arg2: memref<1x16xi32, #tpu.memory_space<vmem>>, %arg3: memref<8x16xbf16, #tpu.memory_space<vmem>>, %arg4: memref<1x16xf32, #tpu.memory_space<vmem>>, %arg5: memref<16x16xbf16, #tpu.memory_space<vmem>>, %arg6: memref<1x16xf32, #tpu.memory_space<vmem>>, %arg7: memref<16x16xbf16, #tpu.memory_space<vmem>>, %arg8: memref<1x16xf32, #tpu.memory_space<vmem>>, %arg9: memref<1x16xf32, #tpu.memory_space<vmem>>, %arg10: memref<1x16xf32, #tpu.memory_space<vmem>>, %arg11: memref<16x128xbf16, #tpu.memory_space<vmem>>, %arg12: memref<1x128xf32, #tpu.memory_space<vmem>>, %arg13: memref<16x128xf32, #tpu.memory_space<vmem>>, %arg14: memref<16x16xf32, #tpu.memory_space<vmem>>) attributes {dimension_semantics = [#tpu.dimension_semantics<arbitrary>], iteration_bounds = array<i64: 1>, scalar_prefetch = 0 : i64, scratch_operands = 1 : i64, tpu.core_type = #tpu.core_type<tc>, window_params = [{transform_indices = @transform_0, window_bounds = array<i64: 16, 8>}, {transform_indices = @transform_1, window_bounds = array<i64: 1, 16>}, {pipeline_mode = #tpu.pipeline_mode<synchronous>, transform_indices = @transform_2, window_bounds = array<i64: 8, 16>}, {pipeline_mode = #tpu.pipeline_mode<synchronous>, transform_indices = @transform_3, window_bounds = array<i64: 1, 16>}, {pipeline_mode = #tpu.pipeline_mode<synchronous>, transform_indices = @transform_4, window_bounds = array<i64: 16, 16>}, {pipeline_mode = #tpu.pipeline_mode<synchronous>, transform_indices = @transform_5, window_bounds = array<i64: 1, 16>}, {pipeline_mode = #tpu.pipeline_mode<synchronous>, transform_indices = @transform_6, window_bounds = array<i64: 16, 16>}, {pipeline_mode = #tpu.pipeline_mode<synchronous>, transform_indices = @transform_7, window_bounds = array<i64: 1, 16>}, {pipeline_mode = #tpu.pipeline_mode<synchronous>, transform_indices = @transform_8, window_bounds = array<i64: 1, 16>}, {pipeline_mode = #tpu.pipeline_mode<synchronous>, transform_indices = @transform_9, window_bounds = array<i64: 1, 16>}, {pipeline_mode = #tpu.pipeline_mode<synchronous>, transform_indices = @transform_10, window_bounds = array<i64: 16, 128>}, {pipeline_mode = #tpu.pipeline_mode<synchronous>, transform_indices = @transform_11, window_bounds = array<i64: 1, 128>}, {pipeline_mode = #tpu.pipeline_mode<synchronous>, transform_indices = @transform_12, window_bounds = array<i64: 16, 128>}]} {
    %c0_i32 = arith.constant 0 : i32
    %0 = arith.cmpi eq, %arg0, %c0_i32 : i32
    %1 = arith.extui %0 : i1 to i32
    %c0_i32_0 = arith.constant 0 : i32
    %2 = arith.cmpi ne, %1, %c0_i32_0 : i32
    scf.if %2 {
      %cst_47 = arith.constant 0.000000e+00 : f32
      %109 = vector.broadcast %cst_47 : f32 to vector<16x16xf32>
      %c0_48 = arith.constant 0 : index
      %c0_49 = arith.constant 0 : index
      %110 = vector.load %arg14[%c0_48, %c0_49] : memref<16x16xf32, #tpu.memory_space<vmem>>, vector<16x16xf32>
      tpu.vector_store %arg14[%c0_48, %c0_49], %109 {strides = array<i32>} : memref<16x16xf32, #tpu.memory_space<vmem>>, vector<16x16xf32>,
    } else {
    }
    %c0 = arith.constant 0 : index
    %c0_1 = arith.constant 0 : index
    %3 = vector.load %arg9[%c0, %c0_1] : memref<1x16xf32, #tpu.memory_space<vmem>>, vector<1x16xf32>
    %c0_2 = arith.constant 0 : index
    %c0_3 = arith.constant 0 : index
    %4 = vector.load %arg10[%c0_2, %c0_3] : memref<1x16xf32, #tpu.memory_space<vmem>>, vector<1x16xf32>
    %c0_4 = arith.constant 0 : index
    %c0_5 = arith.constant 0 : index
    %5 = vector.load %arg1[%c0_4, %c0_5] : memref<16x8xf32, #tpu.memory_space<vmem>>, vector<16x8xf32>
    %6 = arith.truncf %5 : vector<16x8xf32> to vector<16x8xbf16>
    %c0_6 = arith.constant 0 : index
    %c0_7 = arith.constant 0 : index
    %7 = vector.load %arg3[%c0_6, %c0_7] : memref<8x16xbf16, #tpu.memory_space<vmem>>, vector<8x16xbf16>
    %cst = arith.constant dense<0.000000e+00> : vector<16x16xf32>
    %8 = tpu.matmul %6, %7, %cst {dimension_numbers = #tpu.dot_dimension_numbers<[1], [0], [0], [1], [0, 0, 1, 1], [], []>} : vector<16x8xbf16>, vector<8x16xbf16>, vector<16x16xf32> -> vector<16x16xf32>
    %c0_8 = arith.constant 0 : index
    %c0_9 = arith.constant 0 : index
    %9 = vector.load %arg4[%c0_8, %c0_9] : memref<1x16xf32, #tpu.memory_space<vmem>>, vector<1x16xf32>
    %10 = vector.broadcast %9 : vector<1x16xf32> to vector<16x16xf32>
    %11 = arith.addf %8, %10 : vector<16x16xf32>
    %cst_10 = arith.constant 0.000000e+00 : f32
    %12 = vector.broadcast %cst_10 : f32 to vector<16x16xf32>
    %13 = arith.maximumf %11, %12 : vector<16x16xf32>
    %cst_11 = arith.constant dense<0.000000e+00> : vector<16xf32>
    %14 = vector.multi_reduction <add>, %13, %cst_11 [1] : vector<16x16xf32> to vector<16xf32>
    %15 = vector.shape_cast %14 : vector<16xf32> to vector<16x1xf32>
    %cst_12 = arith.constant 1.600000e+01 : f32
    %16 = vector.broadcast %cst_12 : f32 to vector<16x1xf32>
    %17 = arith.divf %15, %16 : vector<16x1xf32>
    %18 = vector.broadcast %17 : vector<16x1xf32> to vector<16x16xf32>
    %19 = arith.subf %13, %18 : vector<16x16xf32>
    %20 = arith.mulf %19, %19 : vector<16x16xf32>
    %cst_13 = arith.constant dense<0.000000e+00> : vector<16xf32>
    %21 = vector.multi_reduction <add>, %20, %cst_13 [1] : vector<16x16xf32> to vector<16xf32>
    %22 = vector.shape_cast %21 : vector<16xf32> to vector<16x1xf32>
    %cst_14 = arith.constant 1.600000e+01 : f32
    %23 = vector.broadcast %cst_14 : f32 to vector<16x1xf32>
    %24 = arith.divf %22, %23 : vector<16x1xf32>
    %25 = vector.broadcast %17 : vector<16x1xf32> to vector<16x16xf32>
    %26 = arith.subf %13, %25 : vector<16x16xf32>
    %cst_15 = arith.constant 9.99999974E-6 : f32
    %27 = vector.broadcast %cst_15 : f32 to vector<16x1xf32>
    %28 = arith.addf %24, %27 : vector<16x1xf32>
    %29 = math.rsqrt %28 : vector<16x1xf32>
    %30 = vector.broadcast %29 : vector<16x1xf32> to vector<16x16xf32>
    %31 = arith.mulf %26, %30 : vector<16x16xf32>
    %32 = vector.broadcast %3 : vector<1x16xf32> to vector<16x16xf32>
    %33 = arith.mulf %31, %32 : vector<16x16xf32>
    %34 = vector.broadcast %4 : vector<1x16xf32> to vector<16x16xf32>
    %35 = arith.addf %33, %34 : vector<16x16xf32>
    %36 = arith.truncf %35 : vector<16x16xf32> to vector<16x16xbf16>
    %c0_16 = arith.constant 0 : index
    %c0_17 = arith.constant 0 : index
    %37 = vector.load %arg5[%c0_16, %c0_17] : memref<16x16xbf16, #tpu.memory_space<vmem>>, vector<16x16xbf16>
    %cst_18 = arith.constant dense<0.000000e+00> : vector<16x16xf32>
    %38 = tpu.matmul %36, %37, %cst_18 {dimension_numbers = #tpu.dot_dimension_numbers<[1], [0], [0], [1], [0, 0, 1, 1], [], []>} : vector<16x16xbf16>, vector<16x16xbf16>, vector<16x16xf32> -> vector<16x16xf32>
    %c0_19 = arith.constant 0 : index
    %c0_20 = arith.constant 0 : index
    %39 = vector.load %arg6[%c0_19, %c0_20] : memref<1x16xf32, #tpu.memory_space<vmem>>, vector<1x16xf32>
    %40 = vector.broadcast %39 : vector<1x16xf32> to vector<16x16xf32>
    %41 = arith.addf %38, %40 : vector<16x16xf32>
    %cst_21 = arith.constant 0.000000e+00 : f32
    %42 = vector.broadcast %cst_21 : f32 to vector<16x16xf32>
    %43 = arith.maximumf %41, %42 : vector<16x16xf32>
    %cst_22 = arith.constant dense<0.000000e+00> : vector<16xf32>
    %44 = vector.multi_reduction <add>, %43, %cst_22 [1] : vector<16x16xf32> to vector<16xf32>
    %45 = vector.shape_cast %44 : vector<16xf32> to vector<16x1xf32>
    %cst_23 = arith.constant 1.600000e+01 : f32
    %46 = vector.broadcast %cst_23 : f32 to vector<16x1xf32>
    %47 = arith.divf %45, %46 : vector<16x1xf32>
    %48 = vector.broadcast %47 : vector<16x1xf32> to vector<16x16xf32>
    %49 = arith.subf %43, %48 : vector<16x16xf32>
    %50 = arith.mulf %49, %49 : vector<16x16xf32>
    %cst_24 = arith.constant dense<0.000000e+00> : vector<16xf32>
    %51 = vector.multi_reduction <add>, %50, %cst_24 [1] : vector<16x16xf32> to vector<16xf32>
    %52 = vector.shape_cast %51 : vector<16xf32> to vector<16x1xf32>
    %cst_25 = arith.constant 1.600000e+01 : f32
    %53 = vector.broadcast %cst_25 : f32 to vector<16x1xf32>
    %54 = arith.divf %52, %53 : vector<16x1xf32>
    %55 = vector.broadcast %47 : vector<16x1xf32> to vector<16x16xf32>
    %56 = arith.subf %43, %55 : vector<16x16xf32>
    %cst_26 = arith.constant 9.99999974E-6 : f32
    %57 = vector.broadcast %cst_26 : f32 to vector<16x1xf32>
    %58 = arith.addf %54, %57 : vector<16x1xf32>
    %59 = math.rsqrt %58 : vector<16x1xf32>
    %60 = vector.broadcast %59 : vector<16x1xf32> to vector<16x16xf32>
    %61 = arith.mulf %56, %60 : vector<16x16xf32>
    %62 = vector.broadcast %3 : vector<1x16xf32> to vector<16x16xf32>
    %63 = arith.mulf %61, %62 : vector<16x16xf32>
    %64 = vector.broadcast %4 : vector<1x16xf32> to vector<16x16xf32>
    %65 = arith.addf %63, %64 : vector<16x16xf32>
    %66 = arith.truncf %65 : vector<16x16xf32> to vector<16x16xbf16>
    %c0_27 = arith.constant 0 : index
    %c0_28 = arith.constant 0 : index
    %67 = vector.load %arg7[%c0_27, %c0_28] : memref<16x16xbf16, #tpu.memory_space<vmem>>, vector<16x16xbf16>
    %cst_29 = arith.constant dense<0.000000e+00> : vector<16x16xf32>
    %68 = tpu.matmul %66, %67, %cst_29 {dimension_numbers = #tpu.dot_dimension_numbers<[1], [0], [0], [1], [0, 0, 1, 1], [], []>} : vector<16x16xbf16>, vector<16x16xbf16>, vector<16x16xf32> -> vector<16x16xf32>
    %c0_30 = arith.constant 0 : index
    %c0_31 = arith.constant 0 : index
    %69 = vector.load %arg8[%c0_30, %c0_31] : memref<1x16xf32, #tpu.memory_space<vmem>>, vector<1x16xf32>
    %70 = vector.broadcast %69 : vector<1x16xf32> to vector<16x16xf32>
    %71 = arith.addf %68, %70 : vector<16x16xf32>
    %cst_32 = arith.constant 0.000000e+00 : f32
    %72 = vector.broadcast %cst_32 : f32 to vector<16x16xf32>
    %73 = arith.maximumf %71, %72 : vector<16x16xf32>
    %cst_33 = arith.constant dense<0.000000e+00> : vector<16xf32>
    %74 = vector.multi_reduction <add>, %73, %cst_33 [1] : vector<16x16xf32> to vector<16xf32>
    %75 = vector.shape_cast %74 : vector<16xf32> to vector<16x1xf32>
    %cst_34 = arith.constant 1.600000e+01 : f32
    %76 = vector.broadcast %cst_34 : f32 to vector<16x1xf32>
    %77 = arith.divf %75, %76 : vector<16x1xf32>
    %78 = vector.broadcast %77 : vector<16x1xf32> to vector<16x16xf32>
    %79 = arith.subf %73, %78 : vector<16x16xf32>
    %80 = arith.mulf %79, %79 : vector<16x16xf32>
    %cst_35 = arith.constant dense<0.000000e+00> : vector<16xf32>
    %81 = vector.multi_reduction <add>, %80, %cst_35 [1] : vector<16x16xf32> to vector<16xf32>
    %82 = vector.shape_cast %81 : vector<16xf32> to vector<16x1xf32>
    %cst_36 = arith.constant 1.600000e+01 : f32
    %83 = vector.broadcast %cst_36 : f32 to vector<16x1xf32>
    %84 = arith.divf %82, %83 : vector<16x1xf32>
    %85 = vector.broadcast %77 : vector<16x1xf32> to vector<16x16xf32>
    %86 = arith.subf %73, %85 : vector<16x16xf32>
    %cst_37 = arith.constant 9.99999974E-6 : f32
    %87 = vector.broadcast %cst_37 : f32 to vector<16x1xf32>
    %88 = arith.addf %84, %87 : vector<16x1xf32>
    %89 = math.rsqrt %88 : vector<16x1xf32>
    %90 = vector.broadcast %89 : vector<16x1xf32> to vector<16x16xf32>
    %91 = arith.mulf %86, %90 : vector<16x16xf32>
    %92 = vector.broadcast %3 : vector<1x16xf32> to vector<16x16xf32>
    %93 = arith.mulf %91, %92 : vector<16x16xf32>
    %94 = vector.broadcast %4 : vector<1x16xf32> to vector<16x16xf32>
    %95 = arith.addf %93, %94 : vector<16x16xf32>
    %c0_38 = arith.constant 0 : index
    %c0_39 = arith.constant 0 : index
    %96 = vector.load %arg2[%c0_38, %c0_39] : memref<1x16xi32, #tpu.memory_space<vmem>>, vector<1x16xi32>
    %97 = tpu.iota {dimensions = array<i32: 0>} : vector<16x16xi32>
    %98 = vector.broadcast %96 : vector<1x16xi32> to vector<16x16xi32>
    %99 = arith.cmpi eq, %97, %98 : vector<16x16xi32>
    %100 = arith.extui %99 : vector<16x16xi1> to vector<16x16xi32>
    %101 = arith.sitofp %100 : vector<16x16xi32> to vector<16x16xf32>
    %c0_40 = arith.constant 0 : index
    %c0_41 = arith.constant 0 : index
    %102 = vector.load %arg14[%c0_40, %c0_41] : memref<16x16xf32, #tpu.memory_space<vmem>>, vector<16x16xf32>
    %cst_42 = arith.constant dense<0.000000e+00> : vector<16x16xf32>
    %103 = tpu.matmul %101, %95, %cst_42 {dimension_numbers = #tpu.dot_dimension_numbers<[1], [0], [0], [1], [0, 0, 1, 1], [], []>} : vector<16x16xf32>, vector<16x16xf32>, vector<16x16xf32> -> vector<16x16xf32>
    %104 = arith.addf %102, %103 : vector<16x16xf32>
    %c0_43 = arith.constant 0 : index
    %c0_44 = arith.constant 0 : index
    %105 = vector.load %arg14[%c0_43, %c0_44] : memref<16x16xf32, #tpu.memory_space<vmem>>, vector<16x16xf32>
    tpu.vector_store %arg14[%c0_43, %c0_44], %104 {strides = array<i32>} : memref<16x16xf32, #tpu.memory_space<vmem>>, vector<16x16xf32>,
    %c0_i32_45 = arith.constant 0 : i32
    %106 = arith.cmpi eq, %arg0, %c0_i32_45 : i32
    %107 = arith.extui %106 : i1 to i32
    %c0_i32_46 = arith.constant 0 : i32
    %108 = arith.cmpi ne, %107, %c0_i32_46 : i32
    scf.if %108 {
      %c0_47 = arith.constant 0 : index
      %c0_48 = arith.constant 0 : index
      %109 = vector.load %arg14[%c0_47, %c0_48] : memref<16x16xf32, #tpu.memory_space<vmem>>, vector<16x16xf32>
      %110 = arith.truncf %109 : vector<16x16xf32> to vector<16x16xbf16>
      %c0_49 = arith.constant 0 : index
      %c0_50 = arith.constant 0 : index
      %111 = vector.load %arg11[%c0_49, %c0_50] : memref<16x128xbf16, #tpu.memory_space<vmem>>, vector<16x128xbf16>
      %cst_51 = arith.constant dense<0.000000e+00> : vector<16x128xf32>
      %112 = tpu.matmul %110, %111, %cst_51 {dimension_numbers = #tpu.dot_dimension_numbers<[1], [0], [0], [1], [0, 0, 1, 1], [], []>} : vector<16x16xbf16>, vector<16x128xbf16>, vector<16x128xf32> -> vector<16x128xf32>
      %c0_52 = arith.constant 0 : index
      %c0_53 = arith.constant 0 : index
      %113 = vector.load %arg12[%c0_52, %c0_53] : memref<1x128xf32, #tpu.memory_space<vmem>>, vector<1x128xf32>
      %114 = vector.broadcast %113 : vector<1x128xf32> to vector<16x128xf32>
      %115 = arith.addf %112, %114 : vector<16x128xf32>
      %c0_54 = arith.constant 0 : index
      %c0_55 = arith.constant 0 : index
      %116 = vector.load %arg13[%c0_54, %c0_55] : memref<16x128xf32, #tpu.memory_space<vmem>>, vector<16x128xf32>
      tpu.vector_store %arg13[%c0_54, %c0_55], %115 {strides = array<i32>} : memref<16x128xf32, #tpu.memory_space<vmem>>, vector<16x128xf32>,
    } else {
    }
    return
  }
  func.func @transform_0(%arg0: i32) -> (i32, i32) {
    %c0_i32 = arith.constant 0 : i32
    %c0_i32_0 = arith.constant 0 : i32
    return %arg0, %c0_i32 : i32, i32
  }
  func.func @transform_1(%arg0: i32) -> (i32, i32) {
    %c0_i32 = arith.constant 0 : i32
    %c0_i32_0 = arith.constant 0 : i32
    return %c0_i32, %arg0 : i32, i32
  }
  func.func @transform_2(%arg0: i32) -> (i32, i32) {
    %c0_i32 = arith.constant 0 : i32
    %c0_i32_0 = arith.constant 0 : i32
    %c0_i32_1 = arith.constant 0 : i32
    return %c0_i32, %c0_i32_0 : i32, i32
  }
  func.func @transform_3(%arg0: i32) -> (i32, i32) {
    %c0_i32 = arith.constant 0 : i32
    %c0_i32_0 = arith.constant 0 : i32
    %c0_i32_1 = arith.constant 0 : i32
    return %c0_i32, %c0_i32_0 : i32, i32
  }
  func.func @transform_4(%arg0: i32) -> (i32, i32) {
    %c0_i32 = arith.constant 0 : i32
    %c0_i32_0 = arith.constant 0 : i32
    %c0_i32_1 = arith.constant 0 : i32
    return %c0_i32, %c0_i32_0 : i32, i32
  }
  func.func @transform_5(%arg0: i32) -> (i32, i32) {
    %c0_i32 = arith.constant 0 : i32
    %c0_i32_0 = arith.constant 0 : i32
    %c0_i32_1 = arith.constant 0 : i32
    return %c0_i32, %c0_i32_0 : i32, i32
  }
  func.func @transform_6(%arg0: i32) -> (i32, i32) {
    %c0_i32 = arith.constant 0 : i32
    %c0_i32_0 = arith.constant 0 : i32
    %c0_i32_1 = arith.constant 0 : i32
    return %c0_i32, %c0_i32_0 : i32, i32
  }
  func.func @transform_7(%arg0: i32) -> (i32, i32) {
    %c0_i32 = arith.constant 0 : i32
    %c0_i32_0 = arith.constant 0 : i32
    %c0_i32_1 = arith.constant 0 : i32
    return %c0_i32, %c0_i32_0 : i32, i32
  }
  func.func @transform_8(%arg0: i32) -> (i32, i32) {
    %c0_i32 = arith.constant 0 : i32
    %c0_i32_0 = arith.constant 0 : i32
    %c0_i32_1 = arith.constant 0 : i32
    return %c0_i32, %c0_i32_0 : i32, i32
  }
  func.func @transform_9(%arg0: i32) -> (i32, i32) {
    %c0_i32 = arith.constant 0 : i32
    %c0_i32_0 = arith.constant 0 : i32
    %c0_i32_1 = arith.constant 0 : i32
    return %c0_i32, %c0_i32_0 : i32, i32
  }
  func.func @transform_10(%arg0: i32) -> (i32, i32) {
    %c0_i32 = arith.constant 0 : i32
    %c0_i32_0 = arith.constant 0 : i32
    %c0_i32_1 = arith.constant 0 : i32
    return %c0_i32, %c0_i32_0 : i32, i32
  }
  func.func @transform_11(%arg0: i32) -> (i32, i32) {
    %c0_i32 = arith.constant 0 : i32
    %c0_i32_0 = arith.constant 0 : i32
    %c0_i32_1 = arith.constant 0 : i32
    return %c0_i32, %c0_i32_0 : i32, i32
  }
  func.func @transform_12(%arg0: i32) -> (i32, i32) {
    %c0_i32 = arith.constant 0 : i32
    %c0_i32_0 = arith.constant 0 : i32
    %c0_i32_1 = arith.constant 0 : i32
    return %c0_i32, %c0_i32_0 : i32, i32
  }
}

</mosaic_0001>

<bundles_post_ra>
// kernel: tpu_custom_call.1
= control target key start
LH: loop header
LB: loop body
LE: loop exit
PB: predicated region body
PF: predicated region fallthrough
CT: control target
= control target key end

     0   :  { %vm67_vm0 = vcmask 1043456   ;;  %v635_v2 = vmov 0.0   ;;  %vm636_vm1 = vmmov 0   ;;  %vm63_vm2 = vcmask 64512   ;;  %s810_s0 = inlined_call_operand.vmem [shape: f32[16,8], index: 0, kind: input, shape index: {}]   ;;  %s811_s1 = inlined_call_operand.vmem [shape: s32[1,16], index: 1, kind: input, shape index: {}]   ;;  %s812_s2 = inlined_call_operand.vmem [shape: bf16[8,16], index: 2, kind: input, shape index: {}]   ;;  %s813_s3 = inlined_call_operand.vmem [shape: f32[1,16], index: 3, kind: input, shape index: {}]   ;;  %s814_s4 = inlined_call_operand.vmem [shape: bf16[16,16], index: 4, kind: input, shape index: {}]   ;;  %s815_s5 = inlined_call_operand.vmem [shape: f32[1,16], index: 5, kind: input, shape index: {}]   ;;  %s816_s6 = inlined_call_operand.vmem [shape: bf16[16,16], index: 6, kind: input, shape index: {}]   ;;  %s817_s7 = inlined_call_operand.vmem [shape: f32[1,16], index: 7, kind: input, shape index: {}]   ;;  %s818_s8 = inlined_call_operand.vmem [shape: f32[1,16], index: 8, kind: input, shape index: {}]   ;;  %s819_s9 = inlined_call_operand.vmem [shape: f32[1,16], index: 9, kind: input, shape index: {}]   ;;  %s820_s10 = inlined_call_operand.vmem [shape: bf16[16,128], index: 10, kind: input, shape index: {}]   ;;  %s821_s11 = inlined_call_operand.vmem [shape: f32[1,128], index: 11, kind: input, shape index: {}]   ;;  %s822_s12 = inlined_call_operand.hbm [shape: f32[16,128], index: 12, kind: output, shape index: {}]  }
   0x1   :  { %v55_v0 = vld [vmem:[%s812_s2] sm:$0xf]  ;;  %556 = vmatprep.subr.bf16.mxu0 %v635_v2  ;;  %558 = vmatprep.mubr.msk.bf16.mxu0 %vm636_vm1, %v635_v2  ;;  %v53_v4 = vld [vmem:[%s810_s0 + $0x8] sm:$0xff] }
   0x2   :  { %v52_v1 = vld [vmem:[%s810_s0] sm:$0xff]  ;;  %v69_v3 = vsel %vm67_vm0, %v55_v0, 0  ;;  %562 = vmatprep.subr.bf16.mxu1 %v635_v2  ;;  %564 = vmatprep.mubr.msk.bf16.mxu1 %vm636_vm1, %v635_v2 }
   0x3   :  { %557 = vmatpush3.bf16.msra.mxu0 %v69_v3  ;;  %v54_v5 = vpack.c.bf16 %v53_v4, %v52_v1 }
   0x4   :  { %568 = vmatprep.subr.bf16.mxu0 %v635_v2 }
   0x5   :  { %17 = vsyncpa [#allocation4], 0  ;;  %vm47_vm3 = vcmask 130048   ;;  %v526_v6 = vld [vmem:[%s813_s3] ss:$0 sm:$0xff] }
   0x6   :  { %559 = vmatmul.mubr.msk.bf16.vlgmr.msra.gmra.mrb[0].mxu0 %vm63_vm2, %v54_v5  ;;  %48 = vst.msk [vmem:[#allocation2] sm:$0xff] %vm47_vm3, %v635_v2  ;;  %49 = vst.msk [vmem:[#allocation2 + $0x8] sm:$0xff] %vm47_vm3, %v635_v2  ;;  %v596_v27 = vld [vmem:[%s814_s4] sm:$0xff]  }
   0x7   :  { %570 = vmatprep.mubr.msk.bf16.mxu0 %vm636_vm1, %v635_v2  ;;  %563 = vmatpush3.bf16.msra.mxu1 %v596_v27  ;;  %v740_v36 = vld [vmem:[%s818_s8] ss:$0 sm:$0xff] }
   0x8   :  { %v746_v40 = vld [vmem:[%s819_s9] ss:$0 sm:$0xff] }
   0x9   :  { %v530_v45 = vld [vmem:[%s815_s5] ss:$0 sm:$0xff] }
   0xa   :  { %v597_v3 = vld [vmem:[%s816_s6] sm:$0xff]  }
   0xb   :  { %569 = vmatpush3.bf16.msra.mxu0 %v597_v3 }
  0xd9   :  { %v105_v7 = vpop.f32.mrb[0].mxu0 }
  0xda   :  { %v106_v8 = vadd.f32 %v526_v6, %v105_v7  ;;  %v560_v9 = vpop.f32.mrb[1].mxu0 }
  0xdb   :  { %v108_v10 = vpop.f32.mrb[2].mxu0 }
  0xdc   :  { %v112_v11 = vmax.f32 %v106_v8, 0.0  ;;  %v109_v12 = vadd.f32 %v526_v6, %v108_v10  ;;  %v561_v13 = vpop.f32.mrb[3].mxu0 }
  0xde   :  { %v113_v14 = vmax.f32 %v109_v12, 0.0  ;;  %v115_v15 = vsel %vm47_vm3, %v112_v11, 0.0 }
  0xdf   :  { %116 = vadd.xlane.f32.xlu0 %v115_v15 }
  0xe0   :  { %v118_v16 = vsel %vm47_vm3, %v113_v14, 0.0 }
  0xe3   :  { %119 = vadd.xlane.f32.xlu0 %v118_v16 }
 0x16c   :  { %v117_v17 = vpop.xlane.xlu0 %116 }
 0x16d   :  { %v122_v18 = vmul.f32 0.0625, %v117_v17 }
 0x16f   :  { %v124_v19 = vsub.f32 %v112_v11, %v122_v18 }
 0x170   :  { %v120_v20 = vpop.xlane.xlu0 %119 }
 0x171   :  { %v123_v21 = vmul.f32 0.0625, %v120_v20  ;;  %v126_v22 = vmul.f32 %v124_v19, %v124_v19 }
 0x173   :  { %v125_v23 = vsub.f32 %v113_v14, %v123_v21  ;;  %v128_v24 = vsel %vm47_vm3, %v126_v22, 0.0 }
 0x174   :  { %129 = vadd.xlane.f32.xlu1 %v128_v24 }
 0x175   :  { %v127_v25 = vmul.f32 %v125_v23, %v125_v23 }
 0x177   :  { %v131_v26 = vsel %vm47_vm3, %v127_v25, 0.0 }
 0x178   :  { %132 = vadd.xlane.f32.xlu1 %v131_v26 }
 0x201   :  { %v130_v28 = vpop.xlane.xlu1 %129 }
 0x202   :  { %v134_v29 = vmul.f32 0.0625, %v130_v28 }
 0x204   :  { %v136_v30 = vadd.f32 1e-05, %v134_v29 }
 0x205   :  { %v133_v31 = vpop.xlane.xlu1 %132 }
 0x206   :  { %599 = vrsqrt.f32 %v136_v30  ;;  %v135_v32 = vmul.f32 0.0625, %v133_v31 }
 0x208   :  { %v137_v33 = vadd.f32 1e-05, %v135_v32 }
 0x20a   :  { %601 = vrsqrt.f32 %v137_v33 }
 0x210   :  { %v600_v34 = vpop.eup %599 }
 0x211   :  { %v140_v35 = vmul.f32 %v600_v34, %v124_v19  ;;  %v533_v19 = vld [vmem:[%s817_s7] ss:$0 sm:$0xff] }
 0x213   :  { %v148_v39 = vmul.f32 %v740_v36, %v140_v35 }
 0x214   :  { %v602_v37 = vpop.eup %601 }
 0x215   :  { %v141_v38 = vmul.f32 %v602_v37, %v125_v23  ;;  %v156_v42 = vadd.f32 %v746_v40, %v148_v39 }
 0x217   :  { %v149_v41 = vmul.f32 %v740_v36, %v141_v38 }
 0x219   :  { %v157_v43 = vadd.f32 %v746_v40, %v149_v41 }
 0x21b   :  { %v158_v44 = vpack.c.bf16 %v157_v43, %v156_v42  ;;  %v343_v42 = vlaneseq }
 0x21d   :  { %565 = vmatmul.mubr.msk.bf16.vlgmr.msra.gmra.mrb[0].mxu1 %vm47_vm3, %v158_v44  ;;  %v344_v43 = vshrl.u32 %v343_v42, 7  ;;  %v536_v44 = vld [vmem:[%s811_s1] ss:$0 sm:$0xff] }
 0x21f   :  { %vm350_vm4 = vcmp.eq.s32.totalorder %v344_v43, %v536_v44 }
 0x2f0   :  { %v211_v46 = vpop.f32.mrb[0].mxu1 }
 0x2f1   :  { %v212_v47 = vadd.f32 %v530_v45, %v211_v46  ;;  %v566_v48 = vpop.f32.mrb[1].mxu1  ;;  %v537_v46 = vsel %vm350_vm4, 1.0, %v635_v2 }
 0x2f2   :  { %v214_v49 = vpop.f32.mrb[2].mxu1  ;;  %578 = vmatprep.mubr.msk.f32.mxu1 %vm47_vm3, %v537_v46 }
 0x2f3   :  { %v218_v50 = vmax.f32 %v212_v47, 0.0  ;;  %v215_v51 = vadd.f32 %v530_v45, %v214_v49  ;;  %v567_v52 = vpop.f32.mrb[3].mxu1  ;;  %v345_v45 = vadd.s32 8, %v344_v43 }
 0x2f5   :  { %v219_v53 = vmax.f32 %v215_v51, 0.0  ;;  %v220_v54 = vsel %vm47_vm3, %v218_v50, 0.0  ;;  %vm351_vm5 = vcmp.eq.s32.totalorder %v345_v45, %v536_v44 }
 0x2f6   :  { %221 = vadd.xlane.f32.xlu0 %v220_v54 }
 0x2f7   :  { %v223_v55 = vsel %vm47_vm3, %v219_v53, 0.0 }
 0x2f8   :  { %224 = vadd.xlane.f32.xlu1 %v223_v55 }
 0x383   :  { %v222_v56 = vpop.xlane.xlu0 %221 }
 0x384   :  { %v226_v57 = vmul.f32 0.0625, %v222_v56 }
 0x385   :  { %v225_v58 = vpop.xlane.xlu1 %224 }
 0x386   :  { %v228_v59 = vsub.f32 %v218_v50, %v226_v57  ;;  %v227_v60 = vmul.f32 0.0625, %v225_v58 }
 0x388   :  { %v229_v61 = vsub.f32 %v219_v53, %v227_v60  ;;  %v230_v62 = vmul.f32 %v228_v59, %v228_v59 }
 0x38a   :  { %v232_v63 = vsel %vm47_vm3, %v230_v62, 0.0  ;;  %v231_v0 = vmul.f32 %v229_v61, %v229_v61  ;;  %v538_v62 = vsel %vm351_vm5, 1.0, %v635_v2 }
 0x38b   :  { %233 = vadd.xlane.f32.xlu0 %v232_v63  ;;  %v357_v63 = vld [vmem:[#allocation2 + $0x8] sm:$0xff] }
 0x38c   :  { %v235_v1 = vsel %vm47_vm3, %v231_v0, 0.0 }
 0x38d   :  { %236 = vadd.xlane.f32.xlu1 %v235_v1 }
 0x418   :  { %v234_v4 = vpop.xlane.xlu0 %233 }
 0x419   :  { %v238_v5 = vmul.f32 0.0625, %v234_v4 }
 0x41a   :  { %v237_v6 = vpop.xlane.xlu1 %236 }
 0x41b   :  { %v240_v7 = vadd.f32 1e-05, %v238_v5  ;;  %v239_v8 = vmul.f32 0.0625, %v237_v6 }
 0x41d   :  { %603 = vrsqrt.f32 %v240_v7  ;;  %v241_v9 = vadd.f32 1e-05, %v239_v8 }
 0x41f   :  { %605 = vrsqrt.f32 %v241_v9 }
 0x427   :  { %v604_v10 = vpop.eup %603 }
 0x428   :  { %v244_v11 = vmul.f32 %v604_v10, %v228_v59 }
 0x429   :  { %v606_v12 = vpop.eup %605 }
 0x42a   :  { %v246_v13 = vmul.f32 %v740_v36, %v244_v11  ;;  %v245_v14 = vmul.f32 %v606_v12, %v229_v61 }
 0x42c   :  { %v247_v15 = vmul.f32 %v740_v36, %v245_v14  ;;  %v248_v16 = vadd.f32 %v746_v40, %v246_v13 }
 0x42e   :  { %v249_v17 = vadd.f32 %v746_v40, %v247_v15 }
 0x430   :  { %v250_v18 = vpack.c.bf16 %v249_v17, %v248_v16 }
 0x432   :  { %571 = vmatmul.mubr.msk.bf16.vlgmr.msra.gmra.mrb[4].mxu0 %vm47_vm3, %v250_v18 }
 0x505   :  { %v303_v20 = vpop.f32.mrb[4].mxu0 }
 0x506   :  { %v304_v21 = vadd.f32 %v533_v19, %v303_v20  ;;  %v572_v22 = vpop.f32.mrb[5].mxu0 }
 0x507   :  { %v306_v23 = vpop.f32.mrb[6].mxu0 }
 0x508   :  { %v310_v24 = vmax.f32 %v304_v21, 0.0  ;;  %v307_v25 = vadd.f32 %v533_v19, %v306_v23  ;;  %v573_v26 = vpop.f32.mrb[7].mxu0 }
 0x50a   :  { %v311_v27 = vmax.f32 %v307_v25, 0.0  ;;  %v312_v28 = vsel %vm47_vm3, %v310_v24, 0.0 }
 0x50b   :  { %313 = vadd.xlane.f32.xlu0 %v312_v28 }
 0x50c   :  { %v315_v29 = vsel %vm47_vm3, %v311_v27, 0.0 }
 0x50d   :  { %316 = vadd.xlane.f32.xlu1 %v315_v29 }
 0x598   :  { %v314_v30 = vpop.xlane.xlu0 %313 }
 0x599   :  { %v318_v31 = vmul.f32 0.0625, %v314_v30 }
 0x59a   :  { %v317_v32 = vpop.xlane.xlu1 %316 }
 0x59b   :  { %v320_v33 = vsub.f32 %v310_v24, %v318_v31  ;;  %v319_v34 = vmul.f32 0.0625, %v317_v32 }
 0x59d   :  { %v321_v35 = vsub.f32 %v311_v27, %v319_v34  ;;  %v322_v37 = vmul.f32 %v320_v33, %v320_v33 }
 0x59f   :  { %v324_v38 = vsel %vm47_vm3, %v322_v37, 0.0  ;;  %v323_v39 = vmul.f32 %v321_v35, %v321_v35 }
 0x5a0   :  { %325 = vadd.xlane.f32.xlu0 %v324_v38 }
 0x5a1   :  { %v327_v41 = vsel %vm47_vm3, %v323_v39, 0.0 }
 0x5a2   :  { %328 = vadd.xlane.f32.xlu1 %v327_v41 }
 0x62d   :  { %v326_v47 = vpop.xlane.xlu0 %325 }
 0x62e   :  { %v330_v48 = vmul.f32 0.0625, %v326_v47 }
 0x62f   :  { %v329_v49 = vpop.xlane.xlu1 %328 }
 0x630   :  { %v332_v50 = vadd.f32 1e-05, %v330_v48  ;;  %v331_v51 = vmul.f32 0.0625, %v329_v49 }
 0x632   :  { %607 = vrsqrt.f32 %v332_v50  ;;  %v333_v52 = vadd.f32 1e-05, %v331_v51 }
 0x634   :  { %609 = vrsqrt.f32 %v333_v52 }
 0x63c   :  { %v608_v53 = vpop.eup %607 }
 0x63d   :  { %v336_v54 = vmul.f32 %v608_v53, %v320_v33 }
 0x63e   :  { %v610_v55 = vpop.eup %609 }
 0x63f   :  { %v337_v56 = vmul.f32 %v610_v55, %v321_v35  ;;  %v338_v57 = vmul.f32 %v740_v36, %v336_v54 }
 0x641   :  { %v339_v58 = vmul.f32 %v740_v36, %v337_v56  ;;  %v340_v59 = vadd.f32 %v746_v40, %v338_v57  ;;  %v598_v36 = vld [vmem:[%s820_s10] sm:$0xff]   ;;  %s637_s10 = smov [#allocation3]  }
 0x642   :  { %s515_s19 = sshll.u32 %s637_s10, 4  ;;  %s516_s19 = int_to_ptr.vmem [resolvable:$true] %s515_s19 }
 0x643   :  { %v341_v60 = vadd.f32 %v746_v40, %v339_v58  ;;  %v356_v40 = vld [vmem:[#allocation2] sm:$0xff]  ;;  %s611_s20 = scalar_lea.vmem %s516_s19, 256  ;;  %p616_p1 = scmp.lt.s32.totalorder %s516_s19, %s516_s19 }
 0x644   :  { %p612_p0 = scmp.ne.s32.totalorder %s516_s19, %s611_s20  ;;  %p617_p2 = scmp.lt.s32.totalorder %s611_s20, %s611_s20 }
 0x645   :  { %v587_v61 = vpack.c.bf16 %v341_v60, %v340_v59 }
 0x646   :  { %p618_p3 = por %p617_p2, %p616_p1 }
 0x647   :  { %588 = vmatprep.subr.bf16.mxu1 %v587_v61 }
 0x648   :  { %590 = vmatpush3.bf16.msra.mxu1 %v587_v61  ;;  %p619_p4 = pnand %p618_p3, %p612_p0 }
 0x649   :  { %581 = vmatprep.subr.bf16.mxu1 %v635_v2 }
 0x64b   :  { %579 = vmatmul.mubr.msk.f32.vlgmr.msra.gmra.mrb[4].mxu1 %vm47_vm3, %v538_v62 }
 0x64c   :  { %583 = vmatprep.mubr.msk.bf16.mxu1 %vm636_vm1, %v635_v2  ;;  %582 = vmatpush3.bf16.msra.mxu1 %v598_v36  ;;  %v541_v2 = vld [vmem:[%s821_s11] ss:$0 sm:$0xff] }
 0x71e   :  { %v580_v0 = vpop.f32.mrb[4].mxu1 }
 0x71f   :  { %v440_v1 = vadd.f32 %v580_v0, %v357_v63  ;;  %v430_v3 = vpop.f32.mrb[5].mxu1 }
 0x720   :  { %v439_v4 = vadd.f32 %v430_v3, %v356_v40 }
 0x721   :  { %442 = vst.msk [vmem:[#allocation2 + $0x8] sm:$0xff] %vm47_vm3, %v440_v1 }
 0x722   :  { %441 = vst.msk [vmem:[#allocation2] sm:$0xff] %vm47_vm3, %v439_v4 }
 0x728   :  { %v447_v5 = vld [vmem:[#allocation2 + $0x8] sm:$0xff] }
 0x729   :  { %v446_v6 = vld [vmem:[#allocation2] sm:$0xff] }
 0x72a   :  { %v448_v7 = vpack.c.bf16 %v447_v5, %v446_v6 }
 0x72c   :  { %584 = vmatmul.mubr.msk.bf16.vlgmr.msra.gmra.mrb[8].mxu1 %vm47_vm3, %v448_v7 }
 0x7ff   :  { %v501_v8 = vpop.f32.mrb[8].mxu1 }
 0x800   :  { %v502_v9 = vadd.f32 %v541_v2, %v501_v8  ;;  %v585_v10 = vpop.f32.mrb[9].mxu1 }
 0x801   :  { %v504_v11 = vpop.f32.mrb[10].mxu1 }
 0x802   :  { %508 = vst [vmem:[#allocation3] sm:$0xff] %v502_v9  ;;  %v505_v12 = vadd.f32 %v541_v2, %v504_v11  ;;  %v586_v13 = vpop.f32.mrb[11].mxu1 }
 0x804   :  { %509 = vst [vmem:[#allocation3 + $0x8] sm:$0xff] %v505_v12 }
 0x805   :  { %622 = shalt.err (!%p619_p4)
}
 0x806   :  { %s623_s22 = scalar_lea.hbm %s822_s12, 256 }
 0x807   :  { %p624_p5 = scmp.ne.s32.totalorder %s822_s12, %s623_s22  ;;  %p627_p6 = scmp.lt.u32.totalorder %s623_s22, %s822_s12 }
 0x809   :  { %p629_p7 = pnand %p627_p6, %p624_p5 }
 0x80b   :  { %632 = shalt.err (!%p629_p7)
}
 0x80c   :  { %s638_s0 = smov 128   ;;  %s639_s2 = smov 8  }
 0x80d   :  { %521 = dma.vmem_to_hbm [thread:$0]  %s516_s19, 256, %s822_s12, [#allocation4], %s638_s0, %s638_s0, %s639_s2  }
 0x80e   :  { %633 = dma.done.wait [#allocation4], 256  }
 0x80f   :  { %634 = vsyncadd [#allocation4], 4294967040 }
 0x810   :  { %525 = vsyncpa [#allocation4], 1 }

</bundles_post_ra>
